<compile_context>
chip_gen: v6e
topology: v6e:2x2x1
jax: 0.10.0
libtpu: 0.0.40
codegen_flags: <defaults>
</compile_context>

<pallas_src>
import jax
import jax.numpy as jnp
from jax import lax
from jax.experimental import pallas as pl
from jax.experimental.pallas import tpu as pltpu


def _round_up(v, m):
    return ((v + m - 1) // m) * m


def _gru_fc_kernel(x_ref, wg_ref, bg_ref, bhn_ref, wfc_ref, bfc_ref, out_ref):
    """Fused GRUCell (h0 == 0) + Linear head on one batch tile.

    x_ref  : (TB, I)      activations
    wg_ref : (I, 3*Hp)    pre-transposed fused gate weights, bands [r|z|n],
                          each band 128-lane aligned (Hp = round_up(H, 128))
    bg_ref : (1, 3*Hp)    fused gate bias [b_ir+b_hr | b_iz+b_hz | b_in]
    bhn_ref: (1, Hp)      hidden bias of the n gate (gated by r)
    wfc_ref: (Hp, Op)     pre-transposed fc weight (zero rows >= H)
    bfc_ref: (1, Op)      fc bias
    out_ref: (TB, Op)
    """
    dn = (((1,), (0,)), ((), ()))            # native (M,K) x (K,N) contraction
    hp = bhn_ref.shape[-1]

    x = x_ref[...].astype(wg_ref.dtype)      # bf16 operands for the MXU

    # One MXU push for all three gates; f32 accumulation, f32 gate math.
    g = lax.dot_general(x, wg_ref[...], dn,
                        preferred_element_type=jnp.float32) + bg_ref[...]
    g_r = g[:, 0 * hp:1 * hp]                # 128-aligned static lane views
    g_z = g[:, 1 * hp:2 * hp]
    g_n = g[:, 2 * hp:3 * hp]

    r = jax.nn.sigmoid(g_r)
    # W_hn @ h0 == 0 (h0 == 0); only the hidden bias survives, gated by r.
    n = jnp.tanh(g_n + r * bhn_ref[...])
    # h' = (1 - z) * n + z * h0 with h0 == 0;  1 - sigmoid(x) == sigmoid(-x).
    h = jax.nn.sigmoid(-g_z) * n

    out = lax.dot_general(h.astype(wfc_ref.dtype), wfc_ref[...], dn,
                          preferred_element_type=jnp.float32) + bfc_ref[...]
    out_ref[...] = out.astype(out_ref.dtype)


def prepare_gru_params(w_ih, b_ih, w_hh, b_hh, w_fc, b_fc,
                       compute_dtype=jnp.bfloat16):
    """One-time parameter prep -- run at init, NOT per forward step.

    Torch layouts in (gate row order r, z, n):
      w_ih (3H, I), b_ih (3H,), w_hh (3H, H), b_hh (3H,), w_fc (O, H), b_fc (O,)
    w_hh is unused because the module always runs the cell with h0 == 0.
    """
    H = w_hh.shape[1]
    I = w_ih.shape[1]
    O = w_fc.shape[0]
    Hp = _round_up(H, 128)                   # 128-lane aligned gate bands
    Op = _round_up(O, 128)                   # lane-dense output (full vst)
    f32 = jnp.float32

    wg = jnp.zeros((I, 3 * Hp), compute_dtype)
    for gi in range(3):                      # pre-transposed (K=I, N=3*Hp) slab
        wg = wg.at[:, gi * Hp:gi * Hp + H].set(
            w_ih[gi * H:(gi + 1) * H].T.astype(compute_dtype))

    bg = jnp.zeros((1, 3 * Hp), f32)
    bg = bg.at[0, 0 * Hp:0 * Hp + H].set((b_ih[0:H] + b_hh[0:H]).astype(f32))
    bg = bg.at[0, 1 * Hp:1 * Hp + H].set((b_ih[H:2 * H] + b_hh[H:2 * H]).astype(f32))
    bg = bg.at[0, 2 * Hp:2 * Hp + H].set(b_ih[2 * H:3 * H].astype(f32))
    bhn = jnp.zeros((1, Hp), f32).at[0, :H].set(b_hh[2 * H:3 * H].astype(f32))

    wfc = jnp.zeros((Hp, Op), compute_dtype).at[:H, :O].set(
        w_fc.T.astype(compute_dtype))
    bfc = jnp.zeros((1, Op), f32).at[0, :O].set(b_fc.astype(f32))

    return {"wg": wg, "bg": bg, "bhn": bhn, "wfc": wfc, "bfc": bfc,
            "H": H, "I": I, "O": O}


def gru_forward(x, params):
    """Forward of the PyTorch GRU module.  x: (B, I) -> (B, O)."""
    wg, bg, bhn = params["wg"], params["bg"], params["bhn"]
    wfc, bfc = params["wfc"], params["bfc"]
    I, O = params["I"], params["O"]
    Hp = bhn.shape[1]
    Op = wfc.shape[1]
    B = x.shape[0]
    out_dtype = x.dtype

    # ---- batch tiling ----------------------------------------------------
    B8 = _round_up(B, 8)
    TB = min(256, B8)                        # big tiles amortize per-step cost
    if B8 >= 16:
        # Ensure >= 2 grid steps so the "parallel" axis shards across the two
        # v7x TensorCores.
        TB = min(TB, _round_up(B8 // 2, 8))
    B_pad = _round_up(B8, TB)
    n_tiles = B_pad // TB
    x_p = x if B_pad == B else jnp.zeros((B_pad, I), x.dtype).at[:B].set(x)

    # ---- explicit VMEM budget (constants single-buffered, I/O double) -----
    nbytes = lambda a: a.size * a.dtype.itemsize
    const_bytes = nbytes(wg) + nbytes(wfc) + nbytes(bg) + nbytes(bhn) + nbytes(bfc)
    io_bytes = 2 * TB * (I * x_p.dtype.itemsize + Op * jnp.dtype(out_dtype).itemsize)
    vmem_limit = min(max(int((const_bytes + io_bytes) * 5 // 4) + (2 << 20), 8 << 20),
                     64 << 20)               # never above v7x physical VMEM
    # TODO(synk): for very large H/O on v7x (resident weights near ~48 MiB even
    # in bf16), tile the 3*Hp / Op weight columns over a second grid axis
    # (256-wide blocks) instead of keeping the whole slabs resident.

    def const_spec(shape):
        # Constant block index for every grid step; single-buffered so the
        # resident weights are allocated once, not double-buffered.
        return pl.BlockSpec(shape, lambda i: (0, 0), pipeline_mode=pl.Buffered(1))

    out_p = pl.pallas_call(
        _gru_fc_kernel,
        out_shape=jax.ShapeDtypeStruct((B_pad, Op), out_dtype),
        grid=(n_tiles,),
        in_specs=[
            pl.BlockSpec((TB, I), lambda i: (i, 0)),   # x: tiled over batch
            const_spec((I, 3 * Hp)),                   # fused gate weights
            const_spec((1, 3 * Hp)),                   # fused gate bias
            const_spec((1, Hp)),                       # b_hn (gated by r)
            const_spec((Hp, Op)),                      # fc weight
            const_spec((1, Op)),                       # fc bias
        ],
        out_specs=pl.BlockSpec((TB, Op), lambda i: (i, 0)),
        compiler_params=pltpu.CompilerParams(
            dimension_semantics=("parallel",),
            vmem_limit_bytes=vmem_limit,
        ),
    )(x_p, wg, bg, bhn, wfc, bfc)

    return out_p[:B, :O]


def _reference(x, w_ih, b_ih, w_hh, b_hh, w_fc, b_fc, compute_dtype=jnp.float32):
    """Pure-JAX reference: torch.nn.GRUCell(x) with h0 = 0, then Linear."""
    H = w_hh.shape[1]
    cd = compute_dtype
    gi = jnp.dot(x.astype(cd), w_ih.T.astype(cd),
                 preferred_element_type=jnp.float32) + b_ih
    r = jax.nn.sigmoid(gi[:, :H] + b_hh[:H])
    z = jax.nn.sigmoid(gi[:, H:2 * H] + b_hh[H:2 * H])
    n = jnp.tanh(gi[:, 2 * H:] + r * b_hh[2 * H:])
    h = (1.0 - z) * n
    return jnp.dot(h.astype(cd), w_fc.T.astype(cd),
                   preferred_element_type=jnp.float32) + b_fc


if __name__ == "__main__":
    batch, input_dim, hidden_dim, output_dim = 8, 16, 32, 8

    key = jax.random.PRNGKey(0)
    k_x, k1, k2, k3, k4, k5, k6 = jax.random.split(key, 7)

    # Deterministic synthetic parameters (PyTorch-style uniform bound).
    bound = 1.0 / jnp.sqrt(hidden_dim)
    x = jax.random.normal(k_x, (batch, input_dim), dtype=jnp.float32)
    w_ih = jax.random.uniform(k1, (3 * hidden_dim, input_dim), minval=-bound, maxval=bound)
    w_hh = jax.random.uniform(k2, (3 * hidden_dim, hidden_dim), minval=-bound, maxval=bound)
    b_ih = jax.random.uniform(k3, (3 * hidden_dim,), minval=-bound, maxval=bound)
    b_hh = jax.random.uniform(k4, (3 * hidden_dim,), minval=-bound, maxval=bound)
    w_fc = jax.random.uniform(k5, (output_dim, hidden_dim), minval=-bound, maxval=bound)
    b_fc = jax.random.uniform(k6, (output_dim,), minval=-bound, maxval=bound)

    # One-time prep (hoisted out of the per-step forward path).
    params = prepare_gru_params(w_ih, b_ih, w_hh, b_hh, w_fc, b_fc)

    out = jax.block_until_ready(gru_forward(x, params))
    assert out.shape == (batch, output_dim)

    # Precision-matched reference (bf16 matmul operands, f32 accumulation).
    ref_bf16 = _reference(x, w_ih, b_ih, w_hh, b_hh, w_fc, b_fc,
                          compute_dtype=jnp.bfloat16)
    assert jnp.allclose(out, ref_bf16, atol=2e-3, rtol=2e-3), "mismatch vs bf16 reference"

    # Full-f32 reference: only bf16 rounding of the matmul operands separates us.
    ref_f32 = _reference(x, w_ih, b_ih, w_hh, b_hh, w_fc, b_fc)
    assert jnp.allclose(out, ref_f32, atol=1e-1, rtol=1e-1), "mismatch vs f32 reference"

    print("KERNEL_OK")
</pallas_src>

<mosaic_0001>
module attributes {stable_mosaic.version = 11 : i64} {
  func.func @_gru_fc_kernel(%arg0: i32, %arg1: memref<8x16xf32, #tpu.memory_space<vmem>>, %arg2: memref<16x384xbf16, #tpu.memory_space<vmem>>, %arg3: memref<1x384xf32, #tpu.memory_space<vmem>>, %arg4: memref<1x128xf32, #tpu.memory_space<vmem>>, %arg5: memref<128x128xbf16, #tpu.memory_space<vmem>>, %arg6: memref<1x128xf32, #tpu.memory_space<vmem>>, %arg7: memref<8x128xf32, #tpu.memory_space<vmem>>) attributes {dimension_semantics = [#tpu.dimension_semantics<parallel>], iteration_bounds = array<i64: 1>, scalar_prefetch = 0 : i64, scratch_operands = 0 : i64, tpu.core_type = #tpu.core_type<tc>, window_params = [{transform_indices = @transform_0, window_bounds = array<i64: 8, 16>}, {pipeline_mode = #tpu.pipeline_mode<synchronous>, transform_indices = @transform_1, window_bounds = array<i64: 16, 384>}, {pipeline_mode = #tpu.pipeline_mode<synchronous>, transform_indices = @transform_2, window_bounds = array<i64: 1, 384>}, {pipeline_mode = #tpu.pipeline_mode<synchronous>, transform_indices = @transform_3, window_bounds = array<i64: 1, 128>}, {pipeline_mode = #tpu.pipeline_mode<synchronous>, transform_indices = @transform_4, window_bounds = array<i64: 128, 128>}, {pipeline_mode = #tpu.pipeline_mode<synchronous>, transform_indices = @transform_5, window_bounds = array<i64: 1, 128>}, {transform_indices = @transform_6, window_bounds = array<i64: 8, 128>}]} {
    %c0 = arith.constant 0 : index
    %c0_0 = arith.constant 0 : index
    %0 = vector.load %arg1[%c0, %c0_0] : memref<8x16xf32, #tpu.memory_space<vmem>>, vector<8x16xf32>
    %1 = arith.truncf %0 : vector<8x16xf32> to vector<8x16xbf16>
    %c0_1 = arith.constant 0 : index
    %c0_2 = arith.constant 0 : index
    %2 = vector.load %arg2[%c0_1, %c0_2] : memref<16x384xbf16, #tpu.memory_space<vmem>>, vector<16x384xbf16>
    %cst = arith.constant dense<0.000000e+00> : vector<8x384xf32>
    %3 = tpu.matmul %1, %2, %cst {dimension_numbers = #tpu.dot_dimension_numbers<[1], [0], [0], [1], [0, 0, 1, 1], [], []>} : vector<8x16xbf16>, vector<16x384xbf16>, vector<8x384xf32> -> vector<8x384xf32>
    %c0_3 = arith.constant 0 : index
    %c0_4 = arith.constant 0 : index
    %4 = vector.load %arg3[%c0_3, %c0_4] : memref<1x384xf32, #tpu.memory_space<vmem>>, vector<1x384xf32>
    %5 = vector.broadcast %4 : vector<1x384xf32> to vector<8x384xf32>
    %6 = arith.addf %3, %5 : vector<8x384xf32>
    %7 = vector.extract_strided_slice %6 {offsets = [0, 0], sizes = [8, 128], strides = [1, 1]} : vector<8x384xf32> to vector<8x128xf32>
    %8 = vector.extract_strided_slice %6 {offsets = [0, 128], sizes = [8, 128], strides = [1, 1]} : vector<8x384xf32> to vector<8x128xf32>
    %9 = vector.extract_strided_slice %6 {offsets = [0, 256], sizes = [8, 128], strides = [1, 1]} : vector<8x384xf32> to vector<8x128xf32>
    %10 = arith.negf %7 : vector<8x128xf32>
    %11 = math.exp %10 : vector<8x128xf32>
    %cst_5 = arith.constant 1.000000e+00 : f32
    %12 = vector.broadcast %cst_5 : f32 to vector<8x128xf32>
    %13 = arith.addf %12, %11 : vector<8x128xf32>
    %14 = arith.divf %12, %13 : vector<8x128xf32>
    %c0_6 = arith.constant 0 : index
    %c0_7 = arith.constant 0 : index
    %15 = vector.load %arg4[%c0_6, %c0_7] : memref<1x128xf32, #tpu.memory_space<vmem>>, vector<1x128xf32>
    %16 = vector.broadcast %15 : vector<1x128xf32> to vector<8x128xf32>
    %17 = arith.mulf %14, %16 : vector<8x128xf32>
    %18 = arith.addf %9, %17 : vector<8x128xf32>
    %19 = math.tanh %18 : vector<8x128xf32>
    %cst_8 = arith.constant 0.000000e+00 : f32
    %20 = vector.broadcast %cst_8 : f32 to vector<8x128xf32>
    %21 = arith.subf %20, %8 : vector<8x128xf32>
    %22 = arith.negf %21 : vector<8x128xf32>
    %23 = math.exp %22 : vector<8x128xf32>
    %cst_9 = arith.constant 1.000000e+00 : f32
    %24 = vector.broadcast %cst_9 : f32 to vector<8x128xf32>
    %25 = arith.addf %24, %23 : vector<8x128xf32>
    %26 = arith.divf %24, %25 : vector<8x128xf32>
    %27 = arith.mulf %26, %19 : vector<8x128xf32>
    %28 = arith.truncf %27 : vector<8x128xf32> to vector<8x128xbf16>
    %c0_10 = arith.constant 0 : index
    %c0_11 = arith.constant 0 : index
    %29 = vector.load %arg5[%c0_10, %c0_11] : memref<128x128xbf16, #tpu.memory_space<vmem>>, vector<128x128xbf16>
    %cst_12 = arith.constant dense<0.000000e+00> : vector<8x128xf32>
    %30 = tpu.matmul %28, %29, %cst_12 {dimension_numbers = #tpu.dot_dimension_numbers<[1], [0], [0], [1], [0, 0, 1, 1], [], []>} : vector<8x128xbf16>, vector<128x128xbf16>, vector<8x128xf32> -> vector<8x128xf32>
    %c0_13 = arith.constant 0 : index
    %c0_14 = arith.constant 0 : index
    %31 = vector.load %arg6[%c0_13, %c0_14] : memref<1x128xf32, #tpu.memory_space<vmem>>, vector<1x128xf32>
    %32 = vector.broadcast %31 : vector<1x128xf32> to vector<8x128xf32>
    %33 = arith.addf %30, %32 : vector<8x128xf32>
    %c0_15 = arith.constant 0 : index
    %c0_16 = arith.constant 0 : index
    %34 = vector.load %arg7[%c0_15, %c0_16] : memref<8x128xf32, #tpu.memory_space<vmem>>, vector<8x128xf32>
    tpu.vector_store %arg7[%c0_15, %c0_16], %33 {strides = array<i32>} : memref<8x128xf32, #tpu.memory_space<vmem>>, vector<8x128xf32>,
    return
  }
  func.func @transform_0(%arg0: i32) -> (i32, i32) {
    %c0_i32 = arith.constant 0 : i32
    %c0_i32_0 = arith.constant 0 : i32
    return %arg0, %c0_i32 : i32, i32
  }
  func.func @transform_1(%arg0: i32) -> (i32, i32) {
    %c0_i32 = arith.constant 0 : i32
    %c0_i32_0 = arith.constant 0 : i32
    %c0_i32_1 = arith.constant 0 : i32
    return %c0_i32, %c0_i32_0 : i32, i32
  }
  func.func @transform_2(%arg0: i32) -> (i32, i32) {
    %c0_i32 = arith.constant 0 : i32
    %c0_i32_0 = arith.constant 0 : i32
    %c0_i32_1 = arith.constant 0 : i32
    return %c0_i32, %c0_i32_0 : i32, i32
  }
  func.func @transform_3(%arg0: i32) -> (i32, i32) {
    %c0_i32 = arith.constant 0 : i32
    %c0_i32_0 = arith.constant 0 : i32
    %c0_i32_1 = arith.constant 0 : i32
    return %c0_i32, %c0_i32_0 : i32, i32
  }
  func.func @transform_4(%arg0: i32) -> (i32, i32) {
    %c0_i32 = arith.constant 0 : i32
    %c0_i32_0 = arith.constant 0 : i32
    %c0_i32_1 = arith.constant 0 : i32
    return %c0_i32, %c0_i32_0 : i32, i32
  }
  func.func @transform_5(%arg0: i32) -> (i32, i32) {
    %c0_i32 = arith.constant 0 : i32
    %c0_i32_0 = arith.constant 0 : i32
    %c0_i32_1 = arith.constant 0 : i32
    return %c0_i32, %c0_i32_0 : i32, i32
  }
  func.func @transform_6(%arg0: i32) -> (i32, i32) {
    %c0_i32 = arith.constant 0 : i32
    %c0_i32_0 = arith.constant 0 : i32
    return %arg0, %c0_i32 : i32, i32
  }
}

</mosaic_0001>

<bundles_post_ra>
// kernel: tpu_custom_call.1
= control target key start
LH: loop header
LB: loop body
LE: loop exit
PB: predicated region body
PF: predicated region fallthrough
CT: control target
= control target key end

     0   :  { %11 = vsyncpa [#allocation3], 0  ;;  %s581_s0 = inlined_call_operand.hbm [shape: f32[8,16], index: 0, kind: input, shape index: {}]   ;;  %s582_s1 = inlined_call_operand.hbm [shape: bf16[16,384], index: 1, kind: input, shape index: {}]   ;;  %s583_s2 = inlined_call_operand.vmem [shape: f32[1,384], index: 2, kind: input, shape index: {}]   ;;  %s584_s3 = inlined_call_operand.vmem [shape: f32[1,128], index: 3, kind: input, shape index: {}]   ;;  %s585_s4 = inlined_call_operand.hbm [shape: bf16[128,128], index: 4, kind: input, shape index: {}]   ;;  %s586_s5 = inlined_call_operand.vmem [shape: f32[1,128], index: 5, kind: input, shape index: {}]   ;;  %s587_s6 = inlined_call_operand.hbm [shape: f32[8,128], index: 6, kind: output, shape index: {}]  }
   0x1   :  { %12 = vsyncpa [#allocation6], 0 }
   0x2   :  { %13 = vsyncpa [#allocation4], 0  ;;  %s514_s21 = smov [#allocation5]  }
   0x3   :  { %s29_s22 = sshll.u32 %s514_s21, 4  ;;  %s30_s22 = int_to_ptr.vmem [resolvable:$true] %s29_s22 }
   0x4   :  { %s436_s23 = scalar_lea.vmem %s30_s22, 384  ;;  %p441_p1 = scmp.lt.s32.totalorder %s30_s22, %s30_s22 }
   0x5   :  { %p437_p0 = scmp.ne.s32.totalorder %s30_s22, %s436_s23  ;;  %p442_p2 = scmp.lt.s32.totalorder %s436_s23, %s436_s23 }
   0x7   :  { %p443_p3 = por %p442_p2, %p441_p1 }
   0x9   :  { %p444_p4 = pnand %p443_p3, %p437_p0 }
   0xb   :  { %447 = shalt.err (!%p444_p4)
}
   0xc   :  { %s515_s24 = smov 192   ;;  %s516_s25 = smov 12  }
   0xd   :  { %35 = dma.hbm_to_vmem [thread:$0]  %s582_s1, 384, %s30_s22, [#allocation6], %s515_s24, %s515_s24, %s516_s25  }
   0xe   :  { %s517_s28 = smov [#allocation2]   ;;  %s518_s30 = smov [#allocation7]  }
   0xf   :  { %s20_s29 = sshll.u32 %s517_s28, 4  ;;  %s45_s7 = sshll.u32 %s518_s30, 4  ;;  %s21_s29 = int_to_ptr.vmem [resolvable:$true] %s20_s29  ;;  %s46_s7 = int_to_ptr.vmem [resolvable:$true] %s45_s7 }
  0x10   :  { %s456_s8 = scalar_lea.vmem %s21_s29, 128  ;;  %p461_p6 = scmp.lt.s32.totalorder %s21_s29, %s21_s29 }
  0x11   :  { %p457_p5 = scmp.ne.s32.totalorder %s21_s29, %s456_s8  ;;  %p462_p7 = scmp.lt.s32.totalorder %s456_s8, %s456_s8 }
  0x13   :  { %p463_p8 = por %p462_p7, %p461_p6 }
  0x15   :  { %p464_p9 = pnand %p463_p8, %p457_p5 }
  0x17   :  { %467 = shalt.err (!%p464_p9)
}
  0x18   :  { %23 = dma.hbm_to_vmem [thread:$0]  %s581_s0, 128, %s21_s29, [#allocation3]  }
  0x19   :  { %s476_s11 = scalar_lea.vmem %s46_s7, 1024  ;;  %p481_p11 = scmp.lt.s32.totalorder %s46_s7, %s46_s7 }
  0x1a   :  { %p477_p10 = scmp.ne.s32.totalorder %s46_s7, %s476_s11  ;;  %p482_p12 = scmp.lt.s32.totalorder %s476_s11, %s476_s11 }
  0x1c   :  { %p483_p13 = por %p482_p12, %p481_p11 }
  0x1e   :  { %p484_p0 = pnand %p483_p13, %p477_p10 }
  0x20   :  { %487 = shalt.err (!%p484_p0)
}
  0x21   :  { %s519_s1 = smov 64   ;;  %s520_s12 = smov 4  }
  0x22   :  { %51 = dma.hbm_to_vmem [thread:$0]  %s585_s4, 1024, %s46_s7, [#allocation6], %s519_s1, %s519_s1, %s520_s12  }
  0x23   :  { %508 = dma.done.wait [#allocation3], 128  }
  0x24   :  { %509 = vsyncadd [#allocation3], 4294967168 }
  0x25   :  { %510 = dma.done.wait [#allocation6], 1408  }
  0x26   :  { %511 = vsyncadd [#allocation6], 4294965888  ;;  %v521_v0 = vmov 0   ;;  %v522_v1 = vmov 0.0   ;;  %vm523_vm0 = vmmov 0   ;;  %v64_v4 = vld [vmem:[#allocation2] sm:$0xff]  ;;  %v72_v15 = vlaneseq }
  0x27   :  { %139 = vmatprep.mubr.bf16.mxu1 %v521_v0  ;;  %375 = vmatprep.subr.bf16.mxu0 %v522_v1  ;;  %v406_v2 = vld [vmem:[#allocation5 + $0x4] ss:$12 sps:$4 sm:$0xff]   ;;  %v408_v3 = vld [vmem:[#allocation5] ss:$12 sps:$4 sm:$0xff]   ;;  %v65_v5 = vpack.c.bf16 %v64_v4, %v64_v4  ;;  %vm103_vm1 = vcmask 130048   ;;  %v413_v10 = vld [vmem:[#allocation7 + $0x20] sm:$0xff]  }
  0x28   :  { %391 = vmatprep.mubr.msk.bf16.mxu0 %vm523_vm0, %v522_v1  ;;  %121 = vmatprep.subr.bf16.mxu1 %v406_v2  ;;  %v409_v6 = vld [vmem:[#allocation5 + $0x8] ss:$12 sps:$4 sm:$0xff]   ;;  %v412_v9 = vld [vmem:[#allocation7 + $0x28] sm:$0xff]   ;;  %v417_v14 = vld [vmem:[#allocation7] sm:$0xff]   ;;  %v73_v16 = vshrl.u32 %v72_v15, 7  ;;  %s524_s18 = smov [#allocation8]  }
  0x29   :  { %122 = vmatpush1.bf16.msra.mxu1 %v408_v3  ;;  %v410_v7 = vld [vmem:[#allocation7 + $0x38] sm:$0xff]   ;;  %v411_v8 = vld [vmem:[#allocation7 + $0x30] sm:$0xff]   ;;  %v416_v13 = vld [vmem:[#allocation7 + $0x8] sm:$0xff]   ;;  %s331_s19 = sshll.u32 %s524_s18, 4  ;;  %s332_s19 = int_to_ptr.vmem [resolvable:$true] %s331_s19 }
  0x2a   :  { %369 = vmatprep.subr.bf16.mxu1 %v522_v1  ;;  %376 = vmatpush3.bf16.msra.mxu0 %v410_v7  ;;  %v414_v11 = vld [vmem:[#allocation7 + $0x18] sm:$0xff]   ;;  %v415_v12 = vld [vmem:[#allocation7 + $0x10] sm:$0xff]   ;;  %v74_v17 = vsub.s32 0, %v73_v16  ;;  %v70_v18 = vld [vmem:[%s583_s2] sm:$0x7]  ;;  %v78_v20 = vsub.s32 1, %v73_v16  ;;  %p493_p2 = scmp.lt.s32.totalorder %s332_s19, %s332_s19 }
  0x2b   :  { %377 = vmatprep.subr.bf16.mxu0 %v522_v1  ;;  %v82_v37 = vsub.s32 2, %v73_v16  ;;  %v347_v40 = vld [vmem:[%s584_s3] ss:$0 sm:$0xff]  ;;  %s488_s3 = scalar_lea.vmem %s332_s19, 128 }
  0x2c   :  { %344 = vmatmul.mubr.msk.bf16.vlgmr.msra.gmra.mxu1 %vm103_vm1, %v65_v5  ;;  %v75_v19 = vrot.slane %v70_v18, %v74_v17  ;;  %v79_v23 = vrot.slane %v70_v18, %v78_v20  ;;  %v349_v50 = vld [vmem:[%s586_s5] ss:$0 sm:$0xff]  ;;  %p489_p1 = scmp.ne.s32.totalorder %s332_s19, %s488_s3  ;;  %p494_p3 = scmp.lt.s32.totalorder %s488_s3, %s488_s3 }
  0x2d   :  { %370 = vmatpush3.bf16.msra.mxu1 %v409_v6  ;;  %371 = vmatprep.mubr.msk.bf16.mxu1 %vm523_vm0, %v522_v1  ;;  %v83_v38 = vrot.slane %v70_v18, %v82_v37 }
  0x2e   :  { %378 = vmatpush3.bf16.msra.mxu0 %v411_v8  ;;  %p495_p4 = por %p494_p3, %p493_p2 }
  0x2f   :  { %379 = vmatprep.subr.bf16.mxu0 %v522_v1 }
  0x30   :  { %p496_p5 = pnand %p495_p4, %p489_p1 }
  0x32   :  { %380 = vmatpush3.bf16.msra.mxu0 %v412_v9 }
  0x33   :  { %381 = vmatprep.subr.bf16.mxu0 %v522_v1 }
  0x34   :  { %372 = vmatmul.mubr.msk.bf16.vlgmr.msra.gmra.mxu1 %vm103_vm1, %v65_v5 }
  0x36   :  { %382 = vmatpush3.bf16.msra.mxu0 %v413_v10 }
  0x37   :  { %383 = vmatprep.subr.bf16.mxu0 %v522_v1 }
  0x3a   :  { %384 = vmatpush3.bf16.msra.mxu0 %v414_v11 }
  0x3b   :  { %385 = vmatprep.subr.bf16.mxu0 %v522_v1 }
  0x3e   :  { %386 = vmatpush3.bf16.msra.mxu0 %v415_v12 }
  0x3f   :  { %387 = vmatprep.subr.bf16.mxu0 %v522_v1 }
  0x42   :  { %388 = vmatpush3.bf16.msra.mxu0 %v416_v13 }
  0x43   :  { %389 = vmatprep.subr.bf16.mxu0 %v522_v1 }
  0x46   :  { %390 = vmatpush3.bf16.msra.mxu0 %v417_v14 }
  0xec   :  { %v141_v21 = vpop.f32.mrf.mxu1 }
  0xed   :  { %v142_v22 = vadd.f32 %v141_v21, %v75_v19 }
  0xee   :  { %v143_v24 = vpop.f32.mrf.mxu1 }
  0xef   :  { %v346_v25 = vmul.f32 -1.442695, %v142_v22  ;;  %v144_v27 = vadd.f32 %v143_v24, %v79_v23 }
  0xf0   :  { %v145_v26 = vpop.f32.mrf.mxu1 }
  0xf1   :  { %418 = vpow2.f32 %v346_v25  ;;  %v204_v30 = vsub.f32 0.0, %v144_v27 }
  0xf2   :  { %v146_v28 = vpop.f32.mrf.mxu1 }
  0xf3   :  { %v348_v33 = vmul.f32 -1.442695, %v204_v30 }
  0xf4   :  { %v182_v29 = vpop.f32.mrf.mxu1 }
  0xf5   :  { %420 = vpow2.f32 %v348_v33  ;;  %v183_v41 = vadd.f32 %v182_v29, %v83_v38 }
  0xf6   :  { %v373_v31 = vpop.f32.mrf.mxu1 }
  0xf8   :  { %v185_v32 = vpop.f32.mrf.mxu1 }
  0xfa   :  { %v374_v34 = vpop.f32.mrf.mxu1 }
  0xfe   :  { %v419_v35 = vpop.eup %418 }
  0xff   :  { %v191_v36 = vadd.f32 1.0, %v419_v35 }
 0x101   :  { %422 = vrcp.f32 %v191_v36 }
 0x102   :  { %v421_v39 = vpop.eup %420 }
 0x103   :  { %v208_v43 = vadd.f32 1.0, %v421_v39 }
 0x105   :  { %424 = vrcp.f32 %v208_v43 }
 0x10e   :  { %v423_v42 = vpop.eup %422 }
 0x10f   :  { %v201_v44 = vmul.f32 %v423_v42, %v347_v40 }
 0x111   :  { %v202_v45 = vadd.f32 %v201_v44, %v183_v41 }
 0x112   :  { %v425_v46 = vpop.eup %424 }
 0x113   :  { %426 = vtanh.f32 %v202_v45 }
 0x120   :  { %v427_v47 = vpop.eup %426 }
 0x121   :  { %v211_v48 = vmul.f32 %v427_v47, %v425_v46 }
 0x123   :  { %v212_v49 = vpack.c.bf16 %v211_v48, %v211_v48 }
 0x125   :  { %392 = vmatmul.mubr.bf16.vlgmr.msra.gmra.mxu0 %v212_v49 }
 0x1e5   :  { %v318_v51 = vpop.f32.mrf.mxu0 }
 0x1e6   :  { %v319_v52 = vadd.f32 %v349_v50, %v318_v51 }
 0x1e7   :  { %v393_v53 = vpop.f32.mrf.mxu0 }
 0x1e8   :  { %324 = vst [vmem:[#allocation8] sm:$0xff] %v319_v52 }
 0x1e9   :  { %v321_v54 = vpop.f32.mrf.mxu0 }
 0x1ea   :  { %499 = shalt.err (!%p496_p5)
}
 0x1eb   :  { %334 = dma.vmem_to_hbm [thread:$0]  %s332_s19, 128, %s587_s6, [#allocation4]   ;;  %v394_v55 = vpop.f32.mrf.mxu0 }
 0x1ec   :  { %512 = dma.done.wait [#allocation4], 128  }
 0x1ed   :  { %513 = vsyncadd [#allocation4], 4294967168 }
 0x1ee   :  { %338 = vsyncpa [#allocation3], 1 }
 0x1ef   :  { %339 = vsyncpa [#allocation6], 1 }
 0x1f0   :  { %340 = vsyncpa [#allocation4], 1 }

</bundles_post_ra>
